<compile_context>
chip_gen: v7x
topology: tpu7x:2x2x1
jax: 0.10.0
libtpu: 0.0.40
codegen_flags: <defaults>
</compile_context>

<pallas_src>
import functools

import jax
import jax.numpy as jnp
from jax import lax
from jax.experimental import pallas as pl
from jax.experimental.pallas import tpu as pltpu

# HBM storage dtype for activations and matmul weights.  Set to jnp.float32 for strict
# (<2e-3) parity with the f32 reference; bf16 halves HBM traffic (v6e/v7x native MXU).
_IO_DTYPE = jnp.bfloat16


# ----------------------------------------------------------------------------------
# Fused kernel: 1x1 expand + bias + ReLU6 -> kxk depthwise + bias + ReLU6 ->
# 1x1 project (+ bias, + residual).  Grid = (batch, hid_tiles); channels-first layout.
# ----------------------------------------------------------------------------------
def _fused_invres_kernel(*refs, k, stride, H, W, has_expand, use_res):
    it = iter(refs)
    x_ref = next(it)                                  # (1, cin, H*W)    IO dtype
    we_ref = next(it) if has_expand else None         # (hid_t, cin)     IO dtype
    bb_ref = next(it)                                 # (hid_t, 2)       f32 [b1 | b2]
    wdw_ref = next(it)                                # (hid_t, k*k)     f32 (BN scale folded)
    wp_ref = next(it)                                 # (1, oup, hid_t)  IO dtype (BN scale folded)
    b3_ref = next(it)                                 # (oup, 1)         f32
    sel_ref = next(it) if stride > 1 else None        # (H*W, Ho*Wo)     f32 0/1 selection
    o_ref = next(it)                                  # (1, oup, Ho*Wo)  IO dtype
    acc_ref = next(it)                                # (oup, Ho*Wo)     f32 scratch

    hk = pl.program_id(1)
    p = (k - 1) // 2
    HW = H * W

    @pl.when(hk == 0)
    def _init():
        acc_ref[...] = jnp.zeros_like(acc_ref)

    x = x_ref[0]                                      # (cin, H*W), lane-dense load

    # ---- 1x1 expand (BN scale pre-folded) + bias + ReLU6: bf16 MXU, f32 accumulate --
    bb = bb_ref[...].astype(jnp.float32)
    if has_expand:
        h1 = jnp.dot(we_ref[...], x, preferred_element_type=jnp.float32)
        h1 = jnp.clip(h1 + bb[:, 0:1], 0.0, 6.0)      # (hid_t, H*W) f32
    else:
        h1 = x.astype(jnp.float32)                    # expand_ratio == 1

    # ---- k x k depthwise: XLU rolls + flat boundary masks (no padded scratch) -------
    pos = lax.broadcasted_iota(jnp.int32, (1, HW), 1)     # flat index  y*W + x
    if W & (W - 1) == 0:
        col = jnp.bitwise_and(pos, W - 1)
    else:
        # TODO(synk): for non-power-of-two W, pass the flat column index in as a tiny
        # constant input if vector integer mod lowers poorly on the target Mosaic.
        col = pos % W
    # Row validity of a flat shift is a contiguous range -> no integer division needed.
    row_ok = [jnp.logical_and(pos >= max(0, -dr) * W, pos < min(H, H - dr) * W)
              for dr in range(-p, p + 1)]
    col_ok = [jnp.logical_and(col >= -dc, col < W - dc) for dc in range(-p, p + 1)]
    wdw = wdw_ref[...].astype(jnp.float32)            # hoisted: single load of all taps

    acc = jnp.zeros_like(h1)
    for dh in range(k):
        dr = dh - p
        for dwi in range(k):
            dc = dwi - p
            d = dr * W + dc                           # out[i] needs h1[i + d]
            if d == 0:
                shifted = h1
            else:
                shifted = jnp.where(jnp.logical_and(row_ok[dh], col_ok[dwi]),
                                    pltpu.roll(h1, (-d) % HW, axis=1), 0.0)
            acc = acc + shifted * wdw[:, dh * k + dwi:dh * k + dwi + 1]
    h2 = jnp.clip(acc + bb[:, 1:2], 0.0, 6.0)         # (hid_t, H*W) f32

    # ---- stride > 1: decimate valid positions with a constant 0/1 selection matmul --
    if stride > 1:
        h2 = jnp.dot(h2, sel_ref[...], preferred_element_type=jnp.float32)

    # ---- 1x1 projection partial sum (hid is the grid reduction axis) ----------------
    acc_ref[...] += jnp.dot(wp_ref[0].astype(jnp.float32), h2,
                            preferred_element_type=jnp.float32)

    # ---- finalize: bias (+ residual), single lane-dense store -----------------------
    @pl.when(hk == pl.num_programs(1) - 1)
    def _finish():
        out = acc_ref[...] + b3_ref[...].astype(jnp.float32)
        if use_res:                                   # stride == 1 and cin == oup
            out = out + x.astype(jnp.float32)
        o_ref[0] = out.astype(o_ref.dtype)


# ----------------------------------------------------------------------------------
# Wrapper: build grid / specs and call the fused kernel.  Input/output stay NCHW
# (only reshaped to (N, C, H*W), which is a free bitcast).
# ----------------------------------------------------------------------------------
def _pick_hid_tile(hid):
    """Largest multiple-of-8 divisor of hid <= 32, preferring >=4 grid steps."""
    if hid % 8 != 0:
        return hid                                    # full-dim blocks are always legal
    for min_tiles in (4, 2):
        for t in (32, 24, 16, 8):
            if hid % t == 0 and hid // t >= min_tiles:
                return t
    return hid


def inverted_residual_forward(x_nchw, params):
    k, stride = params["k"], params["stride"]
    use_res = params["use_res_connect"]
    has_expand = params["we"] is not None
    n, cin, h, w = x_nchw.shape
    p = (k - 1) // 2
    ho = (h + 2 * p - k) // stride + 1
    wo = (w + 2 * p - k) // stride + 1
    hw, howo = h * w, ho * wo
    hid = params["bb"].shape[0]
    oup = params["wp"].shape[0]

    hid_tile = _pick_hid_tile(hid) if has_expand else hid
    nh = hid // hid_tile

    # TODO(synk): for late stages where H*W < 128, pack batch into the lane axis
    # ((C, B*H*W)) so output stores stay lane-dense instead of masked vst.msk.
    x_flat = x_nchw.reshape(n, cin, hw).astype(_IO_DTYPE)

    # Regroup the projection weight so the hid tile sits on the (legal) minor dims.
    wp_grp = params["wp"].reshape(oup, nh, hid_tile).transpose(1, 0, 2)  # (nh, oup, hid_t)

    args = [x_flat]
    in_specs = [pl.BlockSpec((1, cin, hw), lambda b, hk: (b, 0, 0))]
    if has_expand:
        args.append(params["we"])
        in_specs.append(pl.BlockSpec((hid_tile, cin), lambda b, hk: (hk, 0)))
    args += [params["bb"], params["wdw"], wp_grp, params["b3"]]
    in_specs += [
        pl.BlockSpec((hid_tile, 2), lambda b, hk: (hk, 0)),
        pl.BlockSpec((hid_tile, k * k), lambda b, hk: (hk, 0)),
        pl.BlockSpec((1, oup, hid_tile), lambda b, hk: (hk, 0, 0)),
        pl.BlockSpec((oup, 1), lambda b, hk: (0, 0)),
    ]
    if stride > 1:
        yi, xi = jnp.arange(hw) // w, jnp.arange(hw) % w
        yo, xo = jnp.arange(howo) // wo, jnp.arange(howo) % wo
        sel = ((yi[:, None] == yo[None, :] * stride) &
               (xi[:, None] == xo[None, :] * stride)).astype(jnp.float32)
        args.append(sel)
        in_specs.append(pl.BlockSpec((hw, howo), lambda b, hk: (0, 0)))

    kern = functools.partial(_fused_invres_kernel, k=k, stride=stride, H=h, W=w,
                             has_expand=has_expand, use_res=use_res)

    out_flat = pl.pallas_call(
        kern,
        out_shape=jax.ShapeDtypeStruct((n, oup, howo), _IO_DTYPE),
        grid=(n, nh),
        in_specs=in_specs,
        out_specs=pl.BlockSpec((1, oup, howo), lambda b, hk: (b, 0, 0)),
        scratch_shapes=[pltpu.VMEM((oup, howo), jnp.float32)],
        compiler_params=pltpu.CompilerParams(
            dimension_semantics=("parallel", "arbitrary")),
    )(*args)

    return out_flat.reshape(n, oup, ho, wo)           # free bitcast back to NCHW


# ----------------------------------------------------------------------------------
# Deterministic parameter construction (PyTorch shapes), BN folding, JAX reference
# ----------------------------------------------------------------------------------
_EPS = 1e-5


def _fold_bn(gamma, beta, mean, var):
    scale = gamma / jnp.sqrt(var + _EPS)
    return scale.astype(jnp.float32), (beta - mean * scale).astype(jnp.float32)


def make_params(key, inp, oup, k, stride, expand_ratio):
    hidden = int(round(inp * expand_ratio))
    ks = jax.random.split(key, 6)

    def bn_stats(k0, c):
        g = jax.random.uniform(k0, (c,), minval=0.5, maxval=1.5)
        b = jax.random.normal(jax.random.fold_in(k0, 1), (c,)) * 0.1
        m = jax.random.normal(jax.random.fold_in(k0, 2), (c,)) * 0.1
        v = jax.random.uniform(jax.random.fold_in(k0, 3), (c,), minval=0.5, maxval=1.5)
        return g, b, m, v

    pt = {}                                           # PyTorch-layout params (reference)
    kp = {"k": k, "stride": stride,
          "use_res_connect": (stride == 1 and inp == oup)}

    if expand_ratio != 1:
        w_e = jax.random.normal(ks[0], (hidden, inp, 1, 1)) * 0.2       # OIHW
        bn_e = bn_stats(ks[1], hidden)
        pt["expand"] = (w_e, *bn_e)
        s1, b1 = _fold_bn(*bn_e)
        kp["we"] = (w_e[:, :, 0, 0] * s1[:, None]).astype(_IO_DTYPE)    # (hid, cin)
    else:
        pt["expand"] = None
        kp["we"] = None
        b1 = jnp.zeros((hidden,), jnp.float32)

    w_dw = jax.random.normal(ks[2], (hidden, 1, k, k)) * 0.2            # depthwise OIHW
    bn_d = bn_stats(ks[3], hidden)
    pt["dw"] = (w_dw, *bn_d)
    s2, b2 = _fold_bn(*bn_d)
    kp["wdw"] = (w_dw[:, 0].reshape(hidden, k * k) * s2[:, None]).astype(jnp.float32)
    kp["bb"] = jnp.stack([b1, b2], axis=1).astype(jnp.float32)          # (hid, 2)

    w_p = jax.random.normal(ks[4], (oup, hidden, 1, 1)) * 0.2           # OIHW
    bn_p = bn_stats(ks[5], oup)
    pt["proj"] = (w_p, *bn_p)
    s3, b3 = _fold_bn(*bn_p)
    kp["wp"] = (w_p[:, :, 0, 0] * s3[:, None]).astype(_IO_DTYPE)        # (oup, hid)
    kp["b3"] = b3.reshape(oup, 1).astype(jnp.float32)

    return kp, pt


def reference_forward(x, pt, k, stride, use_res):
    def bn(y, g, b, m, v):
        inv = g / jnp.sqrt(v + _EPS)
        return y * inv[None, :, None, None] + (b - m * inv)[None, :, None, None]

    dn = ("NCHW", "OIHW", "NCHW")
    h = x
    if pt["expand"] is not None:
        w, *s = pt["expand"]
        h = lax.conv_general_dilated(h, w, (1, 1), "VALID", dimension_numbers=dn)
        h = jnp.clip(bn(h, *s), 0.0, 6.0)
    w, *s = pt["dw"]
    pad = (k - 1) // 2
    h = lax.conv_general_dilated(h, w, (stride, stride), [(pad, pad), (pad, pad)],
                                 dimension_numbers=dn, feature_group_count=w.shape[0])
    h = jnp.clip(bn(h, *s), 0.0, 6.0)
    w, *s = pt["proj"]
    h = lax.conv_general_dilated(h, w, (1, 1), "VALID", dimension_numbers=dn)
    h = bn(h, *s)
    return x + h if use_res else h


# ----------------------------------------------------------------------------------
if __name__ == "__main__":
    key = jax.random.PRNGKey(0)
    N, H, W = 2, 16, 16
    configs = [
        # (inp, oup, k, stride, expand_ratio)
        (8, 8, 3, 1, 4),      # residual path, stride 1  (hid=32 -> 4 hid tiles)
        (8, 16, 5, 2, 4),     # stride 2 (selection-matmul path), 5x5 kernel, no residual
    ]

    tol = 5e-2 if _IO_DTYPE == jnp.bfloat16 else 2e-3
    for idx, (inp, oup, k, stride, er) in enumerate(configs):
        ck = jax.random.fold_in(key, idx)
        kx, kparams = jax.random.split(ck)
        x = jax.random.normal(kx, (N, inp, H, W), dtype=jnp.float32)    # PyTorch NCHW
        # Round the input once through the HBM storage dtype so kernel and reference
        # consume the identical tensor (the comparison then measures kernel math only
        # up to the bf16 weight storage).
        x_q = x.astype(_IO_DTYPE).astype(jnp.float32)

        kernel_params, torch_params = make_params(kparams, inp, oup, k, stride, er)

        out = jax.block_until_ready(inverted_residual_forward(x_q, kernel_params))
        out = out.astype(jnp.float32)

        use_res = (stride == 1 and inp == oup)
        ref = reference_forward(x_q, torch_params, k, stride, use_res)

        p = (k - 1) // 2
        ho = (H + 2 * p - k) // stride + 1
        assert out.shape == ref.shape == (N, oup, ho, ho), (out.shape, ref.shape)
        max_err = float(jnp.max(jnp.abs(out - ref)))
        mean_err = float(jnp.mean(jnp.abs(out - ref)))
        assert max_err < tol, (idx, max_err)
        assert mean_err < tol / 5.0, (idx, mean_err)

    print("KERNEL_OK")
</pallas_src>

<mosaic_0001>
module attributes {stable_mosaic.version = 11 : i64} {
  func.func @_fused_invres_kernel(%arg0: i32, %arg1: i32, %arg2: memref<1x8x256xbf16, #tpu.memory_space<vmem>>, %arg3: memref<8x8xbf16, #tpu.memory_space<vmem>>, %arg4: memref<8x2xf32, #tpu.memory_space<vmem>>, %arg5: memref<8x9xf32, #tpu.memory_space<vmem>>, %arg6: memref<1x8x8xbf16, #tpu.memory_space<vmem>>, %arg7: memref<8x1xf32, #tpu.memory_space<vmem>>, %arg8: memref<1x8x256xbf16, #tpu.memory_space<vmem>>, %arg9: memref<8x256xf32, #tpu.memory_space<vmem>>) attributes {dimension_semantics = [#tpu.dimension_semantics<parallel>, #tpu.dimension_semantics<arbitrary>], iteration_bounds = array<i64: 2, 4>, scalar_prefetch = 0 : i64, scratch_operands = 1 : i64, tpu.core_type = #tpu.core_type<tc>, window_params = [{transform_indices = @transform_0, window_bounds = array<i64: 1, 8, 256>}, {transform_indices = @transform_1, window_bounds = array<i64: 8, 8>}, {transform_indices = @transform_2, window_bounds = array<i64: 8, 2>}, {transform_indices = @transform_3, window_bounds = array<i64: 8, 9>}, {transform_indices = @transform_4, window_bounds = array<i64: 1, 8, 8>}, {pipeline_mode = #tpu.pipeline_mode<synchronous>, transform_indices = @transform_5, window_bounds = array<i64: 8, 1>}, {transform_indices = @transform_6, window_bounds = array<i64: 1, 8, 256>}]} {
    %c0_i32 = arith.constant 0 : i32
    %0 = arith.cmpi eq, %arg1, %c0_i32 : i32
    %1 = arith.extui %0 : i1 to i32
    %c0_i32_0 = arith.constant 0 : i32
    %2 = arith.cmpi ne, %1, %c0_i32_0 : i32
    scf.if %2 {
      %cst_42 = arith.constant 0.000000e+00 : f32
      %151 = vector.broadcast %cst_42 : f32 to vector<8x256xf32>
      %c0_43 = arith.constant 0 : index
      %c0_44 = arith.constant 0 : index
      %152 = vector.load %arg9[%c0_43, %c0_44] : memref<8x256xf32, #tpu.memory_space<vmem>>, vector<8x256xf32>
      tpu.vector_store %arg9[%c0_43, %c0_44], %151 {strides = array<i32>} : memref<8x256xf32, #tpu.memory_space<vmem>>, vector<8x256xf32>,
    } else {
    }
    %c0 = arith.constant 0 : index
    %c0_1 = arith.constant 0 : index
    %c0_2 = arith.constant 0 : index
    %3 = vector.load %arg2[%c0, %c0_1, %c0_2] : memref<1x8x256xbf16, #tpu.memory_space<vmem>>, vector<1x8x256xbf16>
    %4 = vector.shape_cast %3 : vector<1x8x256xbf16> to vector<8x256xbf16>
    %c0_3 = arith.constant 0 : index
    %c0_4 = arith.constant 0 : index
    %5 = vector.load %arg4[%c0_3, %c0_4] : memref<8x2xf32, #tpu.memory_space<vmem>>, vector<8x2xf32>
    %c0_5 = arith.constant 0 : index
    %c0_6 = arith.constant 0 : index
    %6 = vector.load %arg3[%c0_5, %c0_6] : memref<8x8xbf16, #tpu.memory_space<vmem>>, vector<8x8xbf16>
    %cst = arith.constant dense<0.000000e+00> : vector<8x256xf32>
    %7 = tpu.matmul %6, %4, %cst {dimension_numbers = #tpu.dot_dimension_numbers<[1], [0], [0], [1], [0, 0, 1, 1], [], []>} : vector<8x8xbf16>, vector<8x256xbf16>, vector<8x256xf32> -> vector<8x256xf32>
    %8 = vector.extract_strided_slice %5 {offsets = [0, 0], sizes = [8, 1], strides = [1, 1]} : vector<8x2xf32> to vector<8x1xf32>
    %9 = vector.broadcast %8 : vector<8x1xf32> to vector<8x256xf32>
    %10 = arith.addf %7, %9 : vector<8x256xf32>
    %cst_7 = arith.constant 0.000000e+00 : f32
    %cst_8 = arith.constant 6.000000e+00 : f32
    %11 = vector.broadcast %cst_7 : f32 to vector<8x256xf32>
    %12 = arith.maximumf %11, %10 : vector<8x256xf32>
    %13 = vector.broadcast %cst_8 : f32 to vector<8x256xf32>
    %14 = arith.minimumf %13, %12 : vector<8x256xf32>
    %15 = tpu.iota {dimensions = array<i32: 1>} : vector<1x256xi32>
    %c15_i32 = arith.constant 15 : i32
    %16 = vector.broadcast %c15_i32 : i32 to vector<1x256xi32>
    %17 = arith.andi %15, %16 : vector<1x256xi32>
    %c16_i32 = arith.constant 16 : i32
    %18 = vector.broadcast %c16_i32 : i32 to vector<1x256xi32>
    %19 = arith.cmpi sge, %15, %18 : vector<1x256xi32>
    %c256_i32 = arith.constant 256 : i32
    %20 = vector.broadcast %c256_i32 : i32 to vector<1x256xi32>
    %21 = arith.cmpi slt, %15, %20 : vector<1x256xi32>
    %22 = arith.andi %19, %21 : vector<1x256xi1>
    %c0_i32_9 = arith.constant 0 : i32
    %23 = vector.broadcast %c0_i32_9 : i32 to vector<1x256xi32>
    %24 = arith.cmpi sge, %15, %23 : vector<1x256xi32>
    %c256_i32_10 = arith.constant 256 : i32
    %25 = vector.broadcast %c256_i32_10 : i32 to vector<1x256xi32>
    %26 = arith.cmpi slt, %15, %25 : vector<1x256xi32>
    %27 = arith.andi %24, %26 : vector<1x256xi1>
    %c0_i32_11 = arith.constant 0 : i32
    %28 = vector.broadcast %c0_i32_11 : i32 to vector<1x256xi32>
    %29 = arith.cmpi sge, %15, %28 : vector<1x256xi32>
    %c240_i32 = arith.constant 240 : i32
    %30 = vector.broadcast %c240_i32 : i32 to vector<1x256xi32>
    %31 = arith.cmpi slt, %15, %30 : vector<1x256xi32>
    %32 = arith.andi %29, %31 : vector<1x256xi1>
    %c1_i32 = arith.constant 1 : i32
    %33 = vector.broadcast %c1_i32 : i32 to vector<1x256xi32>
    %34 = arith.cmpi sge, %17, %33 : vector<1x256xi32>
    %c17_i32 = arith.constant 17 : i32
    %35 = vector.broadcast %c17_i32 : i32 to vector<1x256xi32>
    %36 = arith.cmpi slt, %17, %35 : vector<1x256xi32>
    %37 = arith.andi %34, %36 : vector<1x256xi1>
    %c0_i32_12 = arith.constant 0 : i32
    %38 = vector.broadcast %c0_i32_12 : i32 to vector<1x256xi32>
    %39 = arith.cmpi sge, %17, %38 : vector<1x256xi32>
    %c16_i32_13 = arith.constant 16 : i32
    %40 = vector.broadcast %c16_i32_13 : i32 to vector<1x256xi32>
    %41 = arith.cmpi slt, %17, %40 : vector<1x256xi32>
    %42 = arith.andi %39, %41 : vector<1x256xi1>
    %c-1_i32 = arith.constant -1 : i32
    %43 = vector.broadcast %c-1_i32 : i32 to vector<1x256xi32>
    %44 = arith.cmpi sge, %17, %43 : vector<1x256xi32>
    %c15_i32_14 = arith.constant 15 : i32
    %45 = vector.broadcast %c15_i32_14 : i32 to vector<1x256xi32>
    %46 = arith.cmpi slt, %17, %45 : vector<1x256xi32>
    %47 = arith.andi %44, %46 : vector<1x256xi1>
    %c0_15 = arith.constant 0 : index
    %c0_16 = arith.constant 0 : index
    %48 = vector.load %arg5[%c0_15, %c0_16] : memref<8x9xf32, #tpu.memory_space<vmem>>, vector<8x9xf32>
    %cst_17 = arith.constant 0.000000e+00 : f32
    %49 = vector.broadcast %cst_17 : f32 to vector<8x256xf32>
    %50 = arith.andi %22, %37 : vector<1x256xi1>
    %c17_i32_18 = arith.constant 17 : i32
    %51 = tpu.dynamic_rotate %14 by %c17_i32_18 dim 1 : vector<8x256xf32>, i32 -> vector<8x256xf32>
    %cst_19 = arith.constant 0.000000e+00 : f32
    %52 = vector.shape_cast %50 : vector<1x256xi1> to vector<1x256xi1>
    %53 = vector.broadcast %52 : vector<1x256xi1> to vector<8x256xi1>
    %54 = vector.broadcast %cst_19 : f32 to vector<8x256xf32>
    %55 = arith.select %53, %51, %54 : vector<8x256xi1>, vector<8x256xf32>
    %56 = vector.extract_strided_slice %48 {offsets = [0, 0], sizes = [8, 1], strides = [1, 1]} : vector<8x9xf32> to vector<8x1xf32>
    %57 = vector.broadcast %56 : vector<8x1xf32> to vector<8x256xf32>
    %58 = arith.mulf %55, %57 : vector<8x256xf32>
    %59 = arith.addf %49, %58 : vector<8x256xf32>
    %60 = arith.andi %22, %42 : vector<1x256xi1>
    %c16_i32_20 = arith.constant 16 : i32
    %61 = tpu.dynamic_rotate %14 by %c16_i32_20 dim 1 : vector<8x256xf32>, i32 -> vector<8x256xf32>
    %cst_21 = arith.constant 0.000000e+00 : f32
    %62 = vector.shape_cast %60 : vector<1x256xi1> to vector<1x256xi1>
    %63 = vector.broadcast %62 : vector<1x256xi1> to vector<8x256xi1>
    %64 = vector.broadcast %cst_21 : f32 to vector<8x256xf32>
    %65 = arith.select %63, %61, %64 : vector<8x256xi1>, vector<8x256xf32>
    %66 = vector.extract_strided_slice %48 {offsets = [0, 1], sizes = [8, 1], strides = [1, 1]} : vector<8x9xf32> to vector<8x1xf32>
    %67 = vector.broadcast %66 : vector<8x1xf32> to vector<8x256xf32>
    %68 = arith.mulf %65, %67 : vector<8x256xf32>
    %69 = arith.addf %59, %68 : vector<8x256xf32>
    %70 = arith.andi %22, %47 : vector<1x256xi1>
    %c15_i32_22 = arith.constant 15 : i32
    %71 = tpu.dynamic_rotate %14 by %c15_i32_22 dim 1 : vector<8x256xf32>, i32 -> vector<8x256xf32>
    %cst_23 = arith.constant 0.000000e+00 : f32
    %72 = vector.shape_cast %70 : vector<1x256xi1> to vector<1x256xi1>
    %73 = vector.broadcast %72 : vector<1x256xi1> to vector<8x256xi1>
    %74 = vector.broadcast %cst_23 : f32 to vector<8x256xf32>
    %75 = arith.select %73, %71, %74 : vector<8x256xi1>, vector<8x256xf32>
    %76 = vector.extract_strided_slice %48 {offsets = [0, 2], sizes = [8, 1], strides = [1, 1]} : vector<8x9xf32> to vector<8x1xf32>
    %77 = vector.broadcast %76 : vector<8x1xf32> to vector<8x256xf32>
    %78 = arith.mulf %75, %77 : vector<8x256xf32>
    %79 = arith.addf %69, %78 : vector<8x256xf32>
    %80 = arith.andi %27, %37 : vector<1x256xi1>
    %c1_i32_24 = arith.constant 1 : i32
    %81 = tpu.dynamic_rotate %14 by %c1_i32_24 dim 1 : vector<8x256xf32>, i32 -> vector<8x256xf32>
    %cst_25 = arith.constant 0.000000e+00 : f32
    %82 = vector.shape_cast %80 : vector<1x256xi1> to vector<1x256xi1>
    %83 = vector.broadcast %82 : vector<1x256xi1> to vector<8x256xi1>
    %84 = vector.broadcast %cst_25 : f32 to vector<8x256xf32>
    %85 = arith.select %83, %81, %84 : vector<8x256xi1>, vector<8x256xf32>
    %86 = vector.extract_strided_slice %48 {offsets = [0, 3], sizes = [8, 1], strides = [1, 1]} : vector<8x9xf32> to vector<8x1xf32>
    %87 = vector.broadcast %86 : vector<8x1xf32> to vector<8x256xf32>
    %88 = arith.mulf %85, %87 : vector<8x256xf32>
    %89 = arith.addf %79, %88 : vector<8x256xf32>
    %90 = vector.extract_strided_slice %48 {offsets = [0, 4], sizes = [8, 1], strides = [1, 1]} : vector<8x9xf32> to vector<8x1xf32>
    %91 = vector.broadcast %90 : vector<8x1xf32> to vector<8x256xf32>
    %92 = arith.mulf %14, %91 : vector<8x256xf32>
    %93 = arith.addf %89, %92 : vector<8x256xf32>
    %94 = arith.andi %27, %47 : vector<1x256xi1>
    %c255_i32 = arith.constant 255 : i32
    %95 = tpu.dynamic_rotate %14 by %c255_i32 dim 1 : vector<8x256xf32>, i32 -> vector<8x256xf32>
    %cst_26 = arith.constant 0.000000e+00 : f32
    %96 = vector.shape_cast %94 : vector<1x256xi1> to vector<1x256xi1>
    %97 = vector.broadcast %96 : vector<1x256xi1> to vector<8x256xi1>
    %98 = vector.broadcast %cst_26 : f32 to vector<8x256xf32>
    %99 = arith.select %97, %95, %98 : vector<8x256xi1>, vector<8x256xf32>
    %100 = vector.extract_strided_slice %48 {offsets = [0, 5], sizes = [8, 1], strides = [1, 1]} : vector<8x9xf32> to vector<8x1xf32>
    %101 = vector.broadcast %100 : vector<8x1xf32> to vector<8x256xf32>
    %102 = arith.mulf %99, %101 : vector<8x256xf32>
    %103 = arith.addf %93, %102 : vector<8x256xf32>
    %104 = arith.andi %32, %37 : vector<1x256xi1>
    %c241_i32 = arith.constant 241 : i32
    %105 = tpu.dynamic_rotate %14 by %c241_i32 dim 1 : vector<8x256xf32>, i32 -> vector<8x256xf32>
    %cst_27 = arith.constant 0.000000e+00 : f32
    %106 = vector.shape_cast %104 : vector<1x256xi1> to vector<1x256xi1>
    %107 = vector.broadcast %106 : vector<1x256xi1> to vector<8x256xi1>
    %108 = vector.broadcast %cst_27 : f32 to vector<8x256xf32>
    %109 = arith.select %107, %105, %108 : vector<8x256xi1>, vector<8x256xf32>
    %110 = vector.extract_strided_slice %48 {offsets = [0, 6], sizes = [8, 1], strides = [1, 1]} : vector<8x9xf32> to vector<8x1xf32>
    %111 = vector.broadcast %110 : vector<8x1xf32> to vector<8x256xf32>
    %112 = arith.mulf %109, %111 : vector<8x256xf32>
    %113 = arith.addf %103, %112 : vector<8x256xf32>
    %114 = arith.andi %32, %42 : vector<1x256xi1>
    %c240_i32_28 = arith.constant 240 : i32
    %115 = tpu.dynamic_rotate %14 by %c240_i32_28 dim 1 : vector<8x256xf32>, i32 -> vector<8x256xf32>
    %cst_29 = arith.constant 0.000000e+00 : f32
    %116 = vector.shape_cast %114 : vector<1x256xi1> to vector<1x256xi1>
    %117 = vector.broadcast %116 : vector<1x256xi1> to vector<8x256xi1>
    %118 = vector.broadcast %cst_29 : f32 to vector<8x256xf32>
    %119 = arith.select %117, %115, %118 : vector<8x256xi1>, vector<8x256xf32>
    %120 = vector.extract_strided_slice %48 {offsets = [0, 7], sizes = [8, 1], strides = [1, 1]} : vector<8x9xf32> to vector<8x1xf32>
    %121 = vector.broadcast %120 : vector<8x1xf32> to vector<8x256xf32>
    %122 = arith.mulf %119, %121 : vector<8x256xf32>
    %123 = arith.addf %113, %122 : vector<8x256xf32>
    %124 = arith.andi %32, %47 : vector<1x256xi1>
    %c239_i32 = arith.constant 239 : i32
    %125 = tpu.dynamic_rotate %14 by %c239_i32 dim 1 : vector<8x256xf32>, i32 -> vector<8x256xf32>
    %cst_30 = arith.constant 0.000000e+00 : f32
    %126 = vector.shape_cast %124 : vector<1x256xi1> to vector<1x256xi1>
    %127 = vector.broadcast %126 : vector<1x256xi1> to vector<8x256xi1>
    %128 = vector.broadcast %cst_30 : f32 to vector<8x256xf32>
    %129 = arith.select %127, %125, %128 : vector<8x256xi1>, vector<8x256xf32>
    %130 = vector.extract_strided_slice %48 {offsets = [0, 8], sizes = [8, 1], strides = [1, 1]} : vector<8x9xf32> to vector<8x1xf32>
    %131 = vector.broadcast %130 : vector<8x1xf32> to vector<8x256xf32>
    %132 = arith.mulf %129, %131 : vector<8x256xf32>
    %133 = arith.addf %123, %132 : vector<8x256xf32>
    %134 = vector.extract_strided_slice %5 {offsets = [0, 1], sizes = [8, 1], strides = [1, 1]} : vector<8x2xf32> to vector<8x1xf32>
    %135 = vector.broadcast %134 : vector<8x1xf32> to vector<8x256xf32>
    %136 = arith.addf %133, %135 : vector<8x256xf32>
    %cst_31 = arith.constant 0.000000e+00 : f32
    %cst_32 = arith.constant 6.000000e+00 : f32
    %137 = vector.broadcast %cst_31 : f32 to vector<8x256xf32>
    %138 = arith.maximumf %137, %136 : vector<8x256xf32>
    %139 = vector.broadcast %cst_32 : f32 to vector<8x256xf32>
    %140 = arith.minimumf %139, %138 : vector<8x256xf32>
    %c0_33 = arith.constant 0 : index
    %c0_34 = arith.constant 0 : index
    %141 = vector.load %arg9[%c0_33, %c0_34] : memref<8x256xf32, #tpu.memory_space<vmem>>, vector<8x256xf32>
    %c0_35 = arith.constant 0 : index
    %c0_36 = arith.constant 0 : index
    %c0_37 = arith.constant 0 : index
    %142 = vector.load %arg6[%c0_35, %c0_36, %c0_37] : memref<1x8x8xbf16, #tpu.memory_space<vmem>>, vector<1x8x8xbf16>
    %143 = vector.shape_cast %142 : vector<1x8x8xbf16> to vector<8x8xbf16>
    %144 = arith.extf %143 : vector<8x8xbf16> to vector<8x8xf32>
    %cst_38 = arith.constant dense<0.000000e+00> : vector<8x256xf32>
    %145 = tpu.matmul %144, %140, %cst_38 {dimension_numbers = #tpu.dot_dimension_numbers<[1], [0], [0], [1], [0, 0, 1, 1], [], []>} : vector<8x8xf32>, vector<8x256xf32>, vector<8x256xf32> -> vector<8x256xf32>
    %146 = arith.addf %141, %145 : vector<8x256xf32>
    %c0_39 = arith.constant 0 : index
    %c0_40 = arith.constant 0 : index
    %147 = vector.load %arg9[%c0_39, %c0_40] : memref<8x256xf32, #tpu.memory_space<vmem>>, vector<8x256xf32>
    tpu.vector_store %arg9[%c0_39, %c0_40], %146 {strides = array<i32>} : memref<8x256xf32, #tpu.memory_space<vmem>>, vector<8x256xf32>,
    %c3_i32 = arith.constant 3 : i32
    %148 = arith.cmpi eq, %arg1, %c3_i32 : i32
    %149 = arith.extui %148 : i1 to i32
    %c0_i32_41 = arith.constant 0 : i32
    %150 = arith.cmpi ne, %149, %c0_i32_41 : i32
    scf.if %150 {
      %c0_42 = arith.constant 0 : index
      %c0_43 = arith.constant 0 : index
      %151 = vector.load %arg9[%c0_42, %c0_43] : memref<8x256xf32, #tpu.memory_space<vmem>>, vector<8x256xf32>
      %c0_44 = arith.constant 0 : index
      %c0_45 = arith.constant 0 : index
      %152 = vector.load %arg7[%c0_44, %c0_45] : memref<8x1xf32, #tpu.memory_space<vmem>>, vector<8x1xf32>
      %153 = vector.broadcast %152 : vector<8x1xf32> to vector<8x256xf32>
      %154 = arith.addf %151, %153 : vector<8x256xf32>
      %155 = arith.extf %4 : vector<8x256xbf16> to vector<8x256xf32>
      %156 = arith.addf %154, %155 : vector<8x256xf32>
      %157 = arith.truncf %156 : vector<8x256xf32> to vector<8x256xbf16>
      %c0_46 = arith.constant 0 : index
      %c0_47 = arith.constant 0 : index
      %c0_48 = arith.constant 0 : index
      %158 = vector.load %arg8[%c0_46, %c0_47, %c0_48] : memref<1x8x256xbf16, #tpu.memory_space<vmem>>, vector<1x8x256xbf16>
      %159 = vector.shape_cast %158 : vector<1x8x256xbf16> to vector<8x256xbf16>
      %160 = vector.shape_cast %157 : vector<8x256xbf16> to vector<1x8x256xbf16>
      tpu.vector_store %arg8[%c0_46, %c0_47, %c0_48], %160 {strides = array<i32>} : memref<1x8x256xbf16, #tpu.memory_space<vmem>>, vector<1x8x256xbf16>,
    } else {
    }
    return
  }
  func.func @transform_0(%arg0: i32, %arg1: i32) -> (i32, i32, i32) {
    %c0_i32 = arith.constant 0 : i32
    %c0_i32_0 = arith.constant 0 : i32
    %c0_i32_1 = arith.constant 0 : i32
    return %arg0, %c0_i32, %c0_i32_0 : i32, i32, i32
  }
  func.func @transform_1(%arg0: i32, %arg1: i32) -> (i32, i32) {
    %c0_i32 = arith.constant 0 : i32
    %c0_i32_0 = arith.constant 0 : i32
    return %arg1, %c0_i32 : i32, i32
  }
  func.func @transform_2(%arg0: i32, %arg1: i32) -> (i32, i32) {
    %c0_i32 = arith.constant 0 : i32
    %c0_i32_0 = arith.constant 0 : i32
    return %arg1, %c0_i32 : i32, i32
  }
  func.func @transform_3(%arg0: i32, %arg1: i32) -> (i32, i32) {
    %c0_i32 = arith.constant 0 : i32
    %c0_i32_0 = arith.constant 0 : i32
    return %arg1, %c0_i32 : i32, i32
  }
  func.func @transform_4(%arg0: i32, %arg1: i32) -> (i32, i32, i32) {
    %c0_i32 = arith.constant 0 : i32
    %c0_i32_0 = arith.constant 0 : i32
    %c0_i32_1 = arith.constant 0 : i32
    return %arg1, %c0_i32, %c0_i32_0 : i32, i32, i32
  }
  func.func @transform_5(%arg0: i32, %arg1: i32) -> (i32, i32) {
    %c0_i32 = arith.constant 0 : i32
    %c0_i32_0 = arith.constant 0 : i32
    %c0_i32_1 = arith.constant 0 : i32
    return %c0_i32, %c0_i32_0 : i32, i32
  }
  func.func @transform_6(%arg0: i32, %arg1: i32) -> (i32, i32, i32) {
    %c0_i32 = arith.constant 0 : i32
    %c0_i32_0 = arith.constant 0 : i32
    %c0_i32_1 = arith.constant 0 : i32
    return %arg0, %c0_i32, %c0_i32_0 : i32, i32, i32
  }
}

</mosaic_0001>

<bundles_post_ra>
// kernel: tpu_custom_call.1
= control target key start
LH: loop header
LB: loop body
LE: loop exit
PB: predicated region body
PF: predicated region fallthrough
CT: control target
= control target key end

     0   :  { %11 = vsyncpa [#allocation4], 0  ;;  %s1465_s0 = inlined_call_operand.vmem [shape: bf16[2,8,256], index: 0, kind: input, shape index: {}]   ;;  %s1466_s1 = inlined_call_operand.vmem [shape: bf16[32,8], index: 1, kind: input, shape index: {}]   ;;  %s1467_s2 = inlined_call_operand.vmem [shape: f32[32,2], index: 2, kind: input, shape index: {}]   ;;  %s1468_s3 = inlined_call_operand.vmem [shape: f32[32,9], index: 3, kind: input, shape index: {}]   ;;  %s1469_s4 = inlined_call_operand.vmem [shape: bf16[4,8,8], index: 4, kind: input, shape index: {}]   ;;  %s1470_s5 = inlined_call_operand.vmem [shape: f32[8,1], index: 5, kind: input, shape index: {}]   ;;  %s1471_s6 = inlined_call_operand.hbm [shape: bf16[2,8,256], index: 6, kind: output, shape index: {}]  }
   0x1   :  { %13 = vsyncpa [#allocation4 + $0x1], 0  ;;  %s1173_s21 = smov 0   ;;  %s1175_s22 = smov 0  }
   0x2   :  { %s1177_s23 = smov 0   ;;  %s1179_s24 = smov 0  }
   0x3   :  { %s1181_s25 = smov 0   ;;  %s1183_s26 = smov 0  }
   0x4   :  { %s1185_s27 = smov 0   ;;  %s1187_s28 = smov 0  }
   0x5 LB: > { %1481 = sst [smem:[#allocation6_spill]] %s1087_s21  ;;  %s889_s29 = sadd.s32 4294967295, %s1115_s28   ;;  %s1115_s28 = sphi %s1187_s28, %s19_s28   ;;  %s1111_s27 = sphi %s1185_s27, %s1513_s27   ;;  %s1107_s26 = sphi %s1183_s26, %s1512_s26   ;;  %s1103_s25 = sphi %s1181_s25, %s1511_s25   ;;  %s1099_s24 = sphi %s1179_s24, %s1516_s24   ;;  %s1095_s23 = sphi %s1177_s23, %s1509_s23   ;;  %s1091_s22 = sphi %s1175_s22, %s1515_s22   ;;  %s1087_s21 = sphi %s1173_s21, %s1514_s21  }
   0x6   : > { %1482 = sst [smem:[#allocation7_spill]] %s1095_s23  ;;  %s890_s30 = sadd.s32 4294967294, %s1115_s28  }
   0x7   : > { %1483 = sst [smem:[#allocation8_spill]] %s1107_s26  ;;  %s28_s7 = sadd.s32 1, %s1107_s26 }
   0x8   : > { %1484 = sst [smem:[#allocation9_spill]] %s1111_s27  ;;  %p29_p0 = scmp.ge.s32.totalorder %s28_s7, 4 }
   0x9   : > { %1485 = sst [smem:[#allocation10_spill]] %s1115_s28  ;;  %s31_s8 = sadd.s32 1, %s1111_s27 }
   0xa   : > { %p199_p1 = scmp.ne.s32.totalorder %s1095_s23, %s1091_s22  ;;  %p200_p2 = scmp.eq.s32.totalorder %s889_s29, 7 }
   0xb   : > { %s1518_s7 = smov (%p29_p0, %s28_s7), 0  ;;  %s1520_s8 = smov (!%p29_p0, %s31_s8), %s1111_s27 }
   0xc   : > { %1486 = sst [smem:[#allocation11_spill]] %s1518_s7  ;;  %p1222_p3 = por %p200_p2, %p199_p1 }
   0xd   : > { %p205_p4 = scmp.ne.s32.totalorder %s1091_s22, %s1087_s21  ;;  %p33_p5 = scmp.ge.s32.totalorder %s1520_s8, 2 }
   0xe   : > { %p206_p6 = scmp.eq.s32.totalorder %s890_s30, 7  ;;  %p893_p7 = scmp.ge.s32.totalorder %s1115_s28, 1 }
   0xf   : > { %p263_p8 = scmp.lt.s32.totalorder %s1115_s28, 9  ;;  %s1522_s8 = smov (%p33_p5, %s1520_s8), 0 }
  0x10   : > { %1488 = sst [smem:[#allocation12_spill]] %s1522_s8  ;;  %p1232_p9 = por %p206_p6, %p205_p4 }
  0x11   : > { %p264_p10 = pnand %p893_p7, %p263_p8  ;;  %s186_s11 = ssub.s32 %s1111_s27, %s1522_s8 }
  0x12   : > { %s1489_s10 = scalar_select %p1232_p9, 1, 0 }
  0x13   : > { %s189_s12 = sadd.s32 1, %s1095_s23  ;;  %p187_p11 = scmp.eq.s32.totalorder %s186_s11, 0 }
  0x14   : > { %1490 = sst [smem:[#allocation13_spill]] %s1489_s10  ;;  %267 = sbr.rel (%p264_p10) target bundleno = 689 (0x2b1), region = 44 }
  0x15   : > { %s1240_s13 = scalar_select %p187_p11, %s1095_s23, %s189_s12  }
  0x16   : > { %s1475_s14 = sand.u32 (!%p264_p10), 1, %s1091_s22   ;;  %p309_p12 = scmp.lt.s32.totalorder (!%p264_p10), %s1103_s25, 1 }
  0x17   : > { %1491 = sst [smem:[#allocation14_spill]] %s1240_s13  ;;  %s1246_s15 = sshll.u32 (!%p264_p10), %s1475_s14, 3 }
  0x18   : > { %p314_p13 = scmp.lt.s32.totalorder (!%p264_p10), %s1099_s24, 3  ;;  %p901_p0 = scmp.ne.s32.totalorder (!%p264_p10), %s1099_s24, 0 }
  0x1b   : > { %s310_s16 = scalar_select %p309_p12, %s1103_s25, 1 }
  0x1c   : > { %s315_s17 = scalar_select %p314_p13, %s1099_s24, 3 }
  0x1d   : > { %s914_s18 = sshll.u32 %s310_s16, 3  ;;  %334 = sbr.rel (%p901_p0) target bundleno = 36 (0x24), region = 48  ;;  %v1117_v0 = vmov (!%p901_p0), 0.0  }
  0x1e   : > { %s313_s29 = scalar_lea.vmem %s1465_s0, %s914_s18  ;;  %s897_s30 = sshll.u32 %s315_s17, 2  ;;  %335 = vst [vmem:[#allocation2] sm:$0xff] (!%p901_p0), %v1117_v0  ;;  %336 = vst [vmem:[#allocation2 + $0x8] sm:$0xff] (!%p901_p0), %v1117_v0 }
  0x1f   : > { %s317_s8 = scalar_lea.vmem %s1466_s1, %s897_s30  ;;  %s898_s7 = sshll.u32 %s315_s17, 3 }
  0x20   : > { %s321_s14 = scalar_lea.vmem %s1467_s2, %s898_s7  ;;  %s325_s10 = scalar_lea.vmem %s1468_s3, %s898_s7 }
  0x21   : > { %s1266_s28 = scalar_lea.vmem %s1469_s4, %s897_s30  ;;  %s308_s18 = scalar_lea.vmem [#allocation3], %s1246_s15 }
  0x24 PF: > { %v1270_v1 = vld [vmem:[%s313_s29] sm:$0xff]  ;;  %vm354_vm0 = vcmask 1043456   ;;  %v1118_v4 = vmov 0   ;;  %v1119_v8 = vmov 1   ;;  %vm350_vm1 = vcmask 64512   ;;  %s1127_s21 = smov 16  }
  0x25   : > { %v903_v2 = vcombine.high %v1270_v1, %v1270_v1  ;;  %v902_v3 = vcombine.low %v1270_v1, %v1270_v1  ;;  %393 = vmatprep.mubr.bf16.mxu0 %v1118_v4  ;;  %1008 = vset.pattern.permute.xlu0 %v1118_v4  ;;  %v338_v5 = vld [vmem:[%s321_s14] sm:$0xff]  ;;  %v1120_v10 = vmov 2   ;;  %v1121_v11 = vmov 3   ;;  %s1128_s23 = smov 17   ;;  %s1129_s26 = smov 113  }
  0x26   : > { %342 = vperm.xlu0 %1008, %v338_v5   ;;  %v443_v7 = vld [vmem:[%s325_s10] sm:$0xff]  ;;  %1009 = vset.pattern.permute.xlu1 %v1119_v8  ;;  %v1122_v12 = vmov 7   ;;  %v1123_v13 = vmov 4   ;;  %v1124_v14 = vmov 8   ;;  %v1125_v15 = vmov 5   ;;  %s1130_s27 = smov 15  }
  0x27   : > { %904 = vmatprep.subr.msk.bf16.mxu0 %vm354_vm0, %v903_v2  ;;  %v356_v6 = vsel %vm354_vm0, %v902_v3, 0  ;;  %v339_v9 = vld [vmem:[%s317_s8] sm:$0xf]  ;;  %484 = vperm.xlu1 %1009, %v443_v7   ;;  %v1126_v16 = vmov 6   ;;  %s1131_s7 = smov 127   ;;  %s1132_s8 = smov 1   ;;  %v406_v40 = vlaneseq }
  0x28   : > { %362 = vmatpush1.bf16.msra.mxu0 %v356_v6  ;;  %s1133_s10 = smov 112   ;;  %s1134_s13 = smov 111   ;;  %v1135_v28 = vmov 0.0   ;;  %v647_v51 = vld [vmem:[#allocation2] sm:$0xff] }
  0x29   : > { %718 = vmatprep.mubr.f32.mxu1 %v1135_v28  ;;  %v1305_v41 = vand.u32 127, %v406_v40  ;;  %p907_p1 = scmp.ne.s32.totalorder %s1099_s24, 3 }
  0x2a   : > { %461 = vperm.xlu0 %1008, %v443_v7  }
  0x2b   : > { %905 = vmatmul.mubr.msk.bf16.vlgmr.msra.gmra.mrb[0].mxu0 %vm350_vm1, %v339_v9  ;;  %1010 = vset.pattern.permute.xlu1 %v1120_v10  ;;  %v1310_v44 = vadd.s32 128, %v1305_v41  ;;  %v409_v45 = vand.u32 15, %v1305_v41  ;;  %vm411_vm2 = vcmp.ge.s32.totalorder %v1305_v41, 16  ;;  %vm450_vm4 = vcmp.lt.s32.totalorder %v1305_v41, 17 }
  0x2c   : > { %507 = vperm.xlu1 %1010, %v443_v7   ;;  %vm474_vm5 = vcmp.lt.s32.totalorder %v1305_v41, 16  ;;  %vm497_vm9 = vcmp.lt.s32.totalorder %v1305_v41, 15  ;;  %vm520_vm12 = vcmp.lt.s32.totalorder %v1305_v41, 1  ;;  %vm551_vm13 = vcmp.lt.s32.totalorder %v1305_v41, 127 }
  0x2d   : > { %vm1314_vm3 = vcmp.ge.s32.totalorder %v409_v45, 1  ;;  %v410_v49 = vand.u32 15, %v1310_v44  ;;  %vm1321_vm6 = vcmp.lt.s32.totalorder %v409_v45, 15  ;;  %vm422_vm14 = vcmp.lt.s32.totalorder %v1310_v44, 240 }
  0x2e   : > { %1011 = vset.pattern.permute.xlu0 %v1121_v11  ;;  %vm1329_vm7 = vmand %vm411_vm2, %vm1314_vm3  ;;  %vm574_vm15 = vcmp.lt.s32.totalorder %v1305_v41, 113 }
  0x2f   : > { %530 = vperm.xlu0 %1011, %v443_v7   ;;  %vm1333_vm8 = vcmp.ge.s32.totalorder %v410_v49, 1  ;;  %vm491_vm10 = vmand %vm411_vm2, %vm1321_vm6  ;;  %vm1344_vm11 = vcmp.lt.s32.totalorder %v410_v49, 15 }
  0x30   : > { %1015 = vset.pattern.permute.xlu1 %v1122_v12  ;;  %vm1368_vm0 = vmand %vm422_vm14, %vm1333_vm8 }
  0x31   : > { %607 = vperm.xlu1 %1015, %v443_v7  }
  0x33   : > { %1012 = vset.pattern.permute.xlu0 %v1123_v13 }
  0x34   : > { %538 = vperm.xlu0 %1012, %v443_v7  }
  0x35   : > { %1016 = vset.pattern.permute.xlu1 %v1124_v14 }
  0x36   : > { %630 = vperm.xlu1 %1016, %v443_v7  }
  0x38   : > { %1013 = vset.pattern.permute.xlu0 %v1125_v15 }
  0x39   : > { %561 = vperm.xlu0 %1013, %v443_v7  }
  0x3d   : > { %1014 = vset.pattern.permute.xlu0 %v1126_v16 }
  0x3e   : > { %584 = vperm.xlu0 %1014, %v443_v7  }
  0x42   : > { %1017 = vset.pattern.permute.xlu0 %v1119_v8 }
  0xa5   : > { %v343_v17 = vpop.permute.xlu0 %342 }
  0xa6   : > { %v485_v29 = vpop.permute.xlu1 %484 }
  0xa9   : > { %v462_v32 = vpop.permute.xlu0 %461 }
  0xab   : > { %v508_v30 = vpop.permute.xlu1 %507 }
  0xae   : > { %v531_v34 = vpop.permute.xlu0 %530 }
  0xb0   : > { %v1297_v31 = vpop.permute.xlu1 %607 }
  0xb3   : > { %v1301_v36 = vpop.permute.xlu0 %538 }
  0xb5   : > { %v1299_v33 = vpop.permute.xlu1 %630 }
  0xb8   : > { %v1303_v38 = vpop.permute.xlu0 %561 }
  0xbd   : > { %v1307_v43 = vpop.permute.xlu0 %584 }
  0xfe   : > { %v395_v18 = vpop.f32.mrb[0].mxu0 }
  0xff   : > { %v396_v19 = vadd.f32 %v395_v18, %v343_v17  ;;  %v397_v20 = vpop.f32.mrb[1].mxu0 }
 0x100   : > { %v399_v21 = vpop.f32.mrb[2].mxu0  ;;  %v398_v25 = vadd.f32 %v397_v20, %v343_v17 }
 0x101   : > { %v402_v22 = vmax.f32 %v396_v19, 0.0  ;;  %v400_v23 = vpop.f32.mrb[3].mxu0 }
 0x102   : > { %v403_v26 = vmax.f32 %v398_v25, 0.0 }
 0x103   : > { %v1277_v24 = vmin.f32 %v402_v22, 6.0 }
 0x104   : > { %v1283_v27 = vmin.f32 %v403_v26, 6.0 }
 0x105   : > { %470 = vrot.lane.b32.xlu0 %v1277_v24, %s1127_s21  ;;  %446 = vrot.lane.b32.xlu1 %v1277_v24, %s1128_s23 }
 0x109   : > { %570 = vrot.lane.b32.xlu0 %v1277_v24, %s1129_s26  ;;  %493 = vrot.lane.b32.xlu1 %v1277_v24, %s1130_s27 }
 0x10d   : > { %549 = vrot.lane.b32.xlu0 %v1283_v27, %s1131_s7  ;;  %516 = vrot.lane.b32.xlu1 %v1277_v24, %s1132_s8 }
 0x111   : > { %593 = vrot.lane.b32.xlu0 %v1277_v24, %s1133_s10  ;;  %547 = vrot.lane.b32.xlu1 %v1277_v24, %s1131_s7 }
 0x115   : > { %448 = vrot.lane.b32.xlu1 %v1283_v27, %s1128_s23  ;;  %638 = vperm.xlu0 %1017, %v338_v5  }
 0x119   : > { %472 = vrot.lane.b32.xlu1 %v1283_v27, %s1127_s21 }
 0x11d   : > { %495 = vrot.lane.b32.xlu1 %v1283_v27, %s1130_s27 }
 0x121   : > { %518 = vrot.lane.b32.xlu1 %v1283_v27, %s1132_s8 }
 0x125   : > { %616 = vrot.lane.b32.xlu1 %v1277_v24, %s1134_s13 }
 0x129   : > { %572 = vrot.lane.b32.xlu1 %v1283_v27, %s1129_s26 }
 0x12d   : > { %595 = vrot.lane.b32.xlu1 %v1283_v27, %s1133_s10 }
 0x131   : > { %618 = vrot.lane.b32.xlu1 %v1283_v27, %s1134_s13 }
 0x177   : > { %v447_v35 = vpop.permute.xlu1 %446  ;;  %v471_v48 = vpop.permute.xlu0 %470 }
 0x17b   : > { %v494_v37 = vpop.permute.xlu1 %493  ;;  %v571_v3 = vpop.permute.xlu0 %570 }
 0x17f   : > { %v517_v39 = vpop.permute.xlu1 %516  ;;  %v550_v21 = vpop.permute.xlu0 %549 }
 0x183   : > { %v548_v42 = vpop.permute.xlu1 %547  ;;  %v594_v49 = vpop.permute.xlu0 %593 }
 0x184   : > { %v552_v23 = vsel %vm551_vm13, %v548_v42, %v550_v21  ;;  %v553_v28 = vsel %vm551_vm13, %v550_v21, %v548_v42 }
 0x187   : > { %v449_v46 = vpop.permute.xlu1 %448 }
 0x188   : > { %v452_v53 = vsel %vm450_vm4, %v449_v46, %v447_v35  ;;  %v451_v56 = vsel %vm450_vm4, %v447_v35, %v449_v46  ;;  %v558_v35 = vsel %vm1321_vm6, %v552_v23, 0.0  ;;  %vm615_vm4 = vmand %vm422_vm14, %vm1344_vm11  ;;  %v744_v23 = vunpack.c.h.bf16 (!%p907_p1), %v1270_v1 }
 0x189   : > { %v457_v59 = vsel %vm1329_vm7, %v452_v53, 0.0  ;;  %v458_v62 = vsel %vm1333_vm8, %v451_v56, 0.0 }
 0x18a   : > { %v464_v6 = vmul.f32 %v462_v32, %v457_v59  ;;  %v465_v9 = vmul.f32 %v462_v32, %v458_v62 }
 0x18b   : > { %v473_v50 = vpop.permute.xlu1 %472 }
 0x18c   : > { %v476_v54 = vsel %vm474_vm5, %v473_v50, %v471_v48  ;;  %v475_v60 = vsel %vm474_vm5, %v471_v48, %v473_v50 }
 0x18d   : > { %v481_v57 = vsel %vm411_vm2, %v476_v54, 0.0  ;;  %v488_v7 = vmul.f32 %v485_v29, %v475_v60  ;;  %vm597_vm2 = vcmp.lt.s32.totalorder %v1305_v41, 112 }
 0x18e   : > { %v487_v63 = vmul.f32 %v485_v29, %v481_v57  ;;  %v541_v29 = vmul.f32 %v1301_v36, %v1277_v24 }
 0x18f   : > { %v496_v61 = vpop.permute.xlu1 %495  ;;  %v490_v17 = vadd.f32 %v488_v7, %v465_v9 }
 0x190   : > { %v498_v0 = vsel %vm497_vm9, %v494_v37, %v496_v61  ;;  %v499_v2 = vsel %vm497_vm9, %v496_v61, %v494_v37  ;;  %v489_v11 = vadd.f32 %v487_v63, %v464_v6 }
 0x191   : > { %v504_v4 = vsel %vm491_vm10, %v499_v2, 0.0  ;;  %v505_v5 = vsel %vm1344_vm11, %v498_v0, 0.0 }
 0x192   : > { %v510_v8 = vmul.f32 %v508_v30, %v504_v4  ;;  %v511_v12 = vmul.f32 %v508_v30, %v505_v5 }
 0x193   : > { %v519_v10 = vpop.permute.xlu1 %518 }
 0x194   : > { %v521_v13 = vsel %vm520_vm12, %v517_v39, %v519_v10  ;;  %v522_v14 = vsel %vm520_vm12, %v519_v10, %v517_v39  ;;  %v512_v18 = vadd.f32 %v510_v8, %v489_v11  ;;  %v513_v25 = vadd.f32 %v511_v12, %v490_v17  ;;  %v639_v5 = vpop.permute.xlu0 %638  ;;  %v649_v8 = vld [vmem:[%s1266_s28] sm:$0xf] }
 0x195   : > { %v527_v15 = vsel %vm1314_vm3, %v522_v14, 0.0  ;;  %v528_v16 = vsel %vm1333_vm8, %v521_v13, 0.0  ;;  %v559_v39 = vsel %vm1344_vm11, %v553_v28, 0.0  ;;  %v650_v13 = vunpack.c.l.bf16 %v649_v8  ;;  %v648_v14 = vld [vmem:[#allocation2 + $0x8] sm:$0xff] }
 0x196   : > { %v533_v19 = vmul.f32 %v531_v34, %v527_v15  ;;  %v534_v20 = vmul.f32 %v531_v34, %v528_v16  ;;  %v542_v34 = vmul.f32 %v1301_v36, %v1283_v27  ;;  %v564_v27 = vmul.f32 %v1303_v38, %v558_v35 }
 0x197   : > { %v617_v22 = vpop.permute.xlu1 %616  ;;  %v565_v50 = vmul.f32 %v1303_v38, %v559_v39 }
 0x198   : > { %v535_v26 = vadd.f32 %v533_v19, %v512_v18  ;;  %v536_v30 = vadd.f32 %v534_v20, %v513_v25  ;;  %v735_v18 = vld [vmem:[%s1470_s5] sm:$0xff] (!%p907_p1)  ;;  %v1136_v19 = vmov (!%p907_p1), 0  }
 0x199   : > { %1020 = vset.pattern.permute.xlu0 (!%p907_p1), %v1136_v19 }
 0x19a   : > { %v543_v24 = vadd.f32 %v541_v29, %v535_v26  ;;  %v544_v36 = vadd.f32 %v542_v34, %v536_v30  ;;  %738 = vperm.xlu0 (!%p907_p1), %1020, %v735_v18  }
 0x19b   : > { %v573_v37 = vpop.permute.xlu1 %572 }
 0x19c   : > { %v575_v40 = vsel %vm574_vm15, %v571_v3, %v573_v37  ;;  %v576_v42 = vsel %vm574_vm15, %v573_v37, %v571_v3  ;;  %v566_v53 = vadd.f32 %v564_v27, %v543_v24  ;;  %v567_v57 = vadd.f32 %v565_v50, %v544_v36 }
 0x19d   : > { %v581_v45 = vsel %vm1314_vm3, %v575_v40, 0.0  ;;  %v582_v46 = vsel %vm1368_vm0, %v576_v42, 0.0  ;;  %vm620_vm3 = vcmp.lt.s32.totalorder %v1305_v41, 111 }
 0x19e   : > { %v587_v48 = vmul.f32 %v1307_v43, %v581_v45  ;;  %v588_v54 = vmul.f32 %v1307_v43, %v582_v46 }
 0x19f   : > { %v596_v52 = vpop.permute.xlu1 %595 }
 0x1a0   : > { %v598_v55 = vsel %vm597_vm2, %v594_v49, %v596_v52  ;;  %v599_v47 = vsel %vm597_vm2, %v596_v52, %v594_v49  ;;  %v589_v59 = vadd.f32 %v587_v48, %v566_v53  ;;  %v590_v43 = vadd.f32 %v588_v54, %v567_v57 }
 0x1a1   : > { %v605_v56 = vsel %vm422_vm14, %v599_v47, 0.0  ;;  %v610_v60 = vmul.f32 %v1297_v31, %v598_v55 }
 0x1a2   : > { %v611_v61 = vmul.f32 %v1297_v31, %v605_v56 }
 0x1a3   : > { %v619_v38 = vpop.permute.xlu1 %618  ;;  %v612_v4 = vadd.f32 %v610_v60, %v589_v59 }
 0x1a4   : > { %v621_v62 = vsel %vm620_vm3, %v617_v22, %v619_v38  ;;  %v622_v63 = vsel %vm620_vm3, %v619_v38, %v617_v22  ;;  %v613_v31 = vadd.f32 %v611_v61, %v590_v43  ;;  %v743_v22 = vunpack.c.l.bf16 (!%p907_p1), %v1270_v1 }
 0x1a5   : > { %v627_v0 = vsel %vm1321_vm6, %v621_v62, 0.0  ;;  %v628_v41 = vsel %vm615_vm4, %v622_v63, 0.0 }
 0x1a6   : > { %v633_v2 = vmul.f32 %v1299_v33, %v627_v0  ;;  %v634_v3 = vmul.f32 %v1299_v33, %v628_v41 }
 0x1a8   : > { %v635_v58 = vadd.f32 %v633_v2, %v612_v4  ;;  %v636_v6 = vadd.f32 %v634_v3, %v613_v31 }
 0x1aa   : > { %v641_v44 = vadd.f32 %v639_v5, %v635_v58  ;;  %v642_v7 = vadd.f32 %v639_v5, %v636_v6 }
 0x1ac   : > { %v643_v9 = vmax.f32 %v641_v44, 0.0  ;;  %v644_v10 = vmax.f32 %v642_v7, 0.0 }
 0x1ae   : > { %v646_v11 = vmin.f32 %v644_v10, 6.0  ;;  %v645_v12 = vmin.f32 %v643_v9, 6.0 }
 0x1b0   : > { %654 = vmatprep.subr.mxu1 %v646_v11 }
 0x1b1   : > { %655 = vmatpush1.msra.mxu1 %v645_v12 }
 0x1b2   : > { %906 = vmatmul.mubr.msk.f32.vlgmr.msra.gmra.mrb[0].mxu1 %vm350_vm1, %v650_v13 }
 0x219   : > { %v739_v25 = vpop.permute.xlu0 (!%p907_p1), %738 }
 0x283   : > { %732 = sbr.rel (%p907_p1) target bundleno = 664 (0x298), region = 52 }
 0x285   : > { %v720_v33 = vpop.f32.mrb[0].mxu1 }
 0x286   : > { %v725_v15 = vadd.f32 %v720_v33, %v647_v51  ;;  %v722_v16 = vpop.f32.mrb[1].mxu1 }
 0x287   : > { %v726_v17 = vadd.f32 %v722_v16, %v648_v14 }
 0x288   : > { %727 = vst [vmem:[#allocation2] sm:$0xff] %v725_v15 }
 0x289   : > { %728 = vst [vmem:[#allocation2 + $0x8] sm:$0xff] %v726_v17 }
 0x28f   : > { %v733_v20 = vld [vmem:[#allocation2] sm:$0xff] }
 0x290   : > { %v734_v21 = vld [vmem:[#allocation2 + $0x8] sm:$0xff]  ;;  %v741_v26 = vadd.f32 %v739_v25, %v733_v20 }
 0x291   : > { %v742_v28 = vadd.f32 %v739_v25, %v734_v21 }
 0x292   : > { %v745_v29 = vadd.f32 %v743_v22, %v741_v26 }
 0x293   : > { %v746_v30 = vadd.f32 %v744_v23, %v742_v28 }
 0x295   : > { %v915_v32 = vpack.c.bf16 %v746_v30, %v745_v29 }
 0x297   : > { %755 = vst [vmem:[%s308_s18] sm:$0xff] %v915_v32 }
 0x298 PF: > { %s916_s24 = sshll.u32 %s1103_s25, 7  ;;  %s771_s29 = sshll.u32 %s308_s18, 4  ;;  %s772_s29 = int_to_ptr.vmem [resolvable:$true] %s771_s29 }
 0x299   : > { %s1414_s20 = scalar_lea.hbm %s1471_s6, %s916_s24  ;;  %s1504_s30 = sand.u32 1, %s1091_s22  }
 0x29a   : > { %s757_s11 = scalar_lea.sflag [#allocation4], %s1504_s30  ;;  %s1021_s12 = scalar_lea.vmem %s772_s29, 128 }
 0x29b   : > { %p1022_p2 = scmp.ne.s32.totalorder %s772_s29, %s1021_s12  ;;  %s1137_s16 = smov [#allocation3]  }
 0x29c   : > { %s1025_s21 = sshll.u32 %s1137_s16, 4  ;;  %s1026_s21 = int_to_ptr.vmem [resolvable:$false] %s1025_s21 }
 0x29d   : > { %p1023_p4 = pnand %p1022_p2, %p1222_p3  ;;  %s1027_s23 = scalar_lea.vmem %s1026_s21, 256 }
 0x29e   : > { %p1028_p6 = scmp.lt.s32.totalorder %s772_s29, %s1026_s21  ;;  %p1029_p7 = scmp.lt.s32.totalorder %s1027_s23, %s1021_s12 }
 0x29f   : > { %p1024_p5 = pneg %p1023_p4 }
 0x2a0   : > { %p1030_p8 = por %p1029_p7, %p1028_p6 }
 0x2a2   : > { %p1031_p10 = pnand %p1030_p8, %p1024_p5 }
 0x2a4   : > { %1034 = shalt.err (!%p1031_p10)
}
 0x2a5   : > { %s1035_s25 = scalar_lea.hbm %s1414_s20, 128  ;;  %s1039_s26 = scalar_lea.hbm %s1471_s6, 256 }
 0x2a6   : > { %p1036_p11 = scmp.ne.s32.totalorder %s1414_s20, %s1035_s25  ;;  %p1040_p0 = scmp.lt.u32.totalorder %s1414_s20, %s1471_s6 }
 0x2a7   : > { %p1041_p1 = scmp.lt.u32.totalorder %s1039_s26, %s1035_s25  ;;  %p1043_p4 = scmp.lt.u32.totalorder %s1035_s25, %s1414_s20 }
 0x2a8   : > { %p1037_p12 = pnand %p1036_p11, %p1222_p3 }
 0x2a9   : > { %p1042_p2 = por %p1041_p1, %p1040_p0 }
 0x2aa   : > { %p1038_p13 = pneg %p1037_p12 }
 0x2ab   : > { %p1044_p5 = por %p1043_p4, %p1042_p2 }
 0x2ad   : > { %p1045_p6 = pnand %p1044_p5, %p1038_p13 }
 0x2af   : > { %1048 = shalt.err (!%p1045_p6)
}
 0x2b0   : > { %917 = dma.vmem_to_hbm [thread:$0]  (%p1222_p3), %s772_s29, 128, %s1414_s20, %s757_s11  }
 0x2b1 PF: > { %s1505_s8 = sld [smem:[#allocation10_spill]]  ;;  %s1506_s10 = sld [smem:[#allocation6_spill]] }
 0x2b7   : > { %p923_p7 = scmp.ge.s32.totalorder %s1505_s8, 2  ;;  %s783_s28 = sand.u32 1, %s1506_s10  }
 0x2b8   : > { %s784_s14 = scalar_lea.sflag [#allocation4], %s783_s28 }
 0x2b9   : > { %p920_p8 = pnand %p923_p7, %p1232_p9 }
 0x2bb   : > { %1082 = dma.done.wait (!%p920_p8), %s784_s14, 128  }
 0x2bc   : > { %1084 = vsyncadd (!%p920_p8), %s784_s14, 4294967168  ;;  %s19_s28 = sadd.s32 1, %s1505_s8   ;;  %s1508_s24 = sld [smem:[#allocation7_spill]] }
 0x2bd   : > { %p16_p10 = scmp.ge.s32.totalorder %s19_s28, 10   ;;  %s1509_s23 = sld [smem:[#allocation14_spill]] }
 0x2be   : > { %s1510_s9 = sld [smem:[#allocation8_spill]]  ;;  %s1511_s25 = sld [smem:[#allocation9_spill]] }
 0x2bf   : > { %s1512_s26 = sld [smem:[#allocation11_spill]]  ;;  %s1513_s27 = sld [smem:[#allocation12_spill]] }
 0x2c0   : > { %s1514_s21 = smov %s1091_s22  ;;  %18 = sbr.rel (!%p16_p10) target bundleno = 5 (0x5), region = 99 }
 0x2c2   : > { %s1515_s22 = smov %s1508_s24 }
 0x2c4   : > { %s1516_s24 = smov %s1510_s9 }
 0x2c7   :  { %789 = vsyncpa [#allocation4], 1 }
 0x2c8   :  { %791 = vsyncpa [#allocation4 + $0x1], 1 }

</bundles_post_ra>
